<compile_context>
chip_gen: v5e
topology: v5e:2x2
jax: 0.10.0
libtpu: 0.0.40
codegen_flags: <defaults>
</compile_context>

<pallas_src>
import functools
import math

import jax
import jax.numpy as jnp
from jax.experimental import pallas as pl
from jax.experimental.pallas import tpu as pltpu


def _layer_norm(z, gamma, beta, eps=1e-5):
    mu = jnp.mean(z, axis=-1, keepdims=True)
    var = jnp.mean((z - mu) ** 2, axis=-1, keepdims=True)
    return (z - mu) * jax.lax.rsqrt(var + eps) * gamma + beta


def encoder_kernel(x_ref, wqkv_ref, bqkv_ref, wo_ref, bo_ref,
                   w1_ref, b1_ref, w2_ref, b2_ref,
                   g1_ref, be1_ref, g2_ref, be2_ref, out_ref, *, n_heads):
    TB, L, E = x_ref.shape
    H = n_heads
    cdt = wqkv_ref.dtype           # matmul-operand dtype (f32, or bf16 on v6e/v7x)

    x3 = x_ref[...]                              # (TB, L, E), f32
    x2 = x3.reshape(TB * L, E)                   # leading-dim merge only (cheap)

    # ---- fused QKV in-projection: ONE (TB*L, E) @ (E, 3E) MXU matmul -------------
    # (PyTorch Linear y = x @ W^T + b; W^T and the 1/sqrt(dh) scale were folded in
    #  the wrapper, so no transposes or score scaling happen inside the kernel.)
    qkv = jnp.dot(x2.astype(cdt), wqkv_ref[...],
                  preferred_element_type=jnp.float32) + bqkv_ref[...]
    q = qkv[:, :E]
    k = qkv[:, E:2 * E]
    v = qkv[:, 2 * E:]

    # ---- multi-head attention: heads x batch-tile as ONE einsum batch dim --------
    # split:  (TB*L, E) -> (H*TB, L, dh)   (static lane slices + leading concat only)
    # merge:  (H*TB, L, dh) -> (TB*L, E)   (leading slices + lane concat only)
    def split_heads(t):
        t = t.reshape(TB, L, E)                              # leading split (cheap)
        return jnp.concatenate(jnp.split(t, H, axis=-1), axis=0)

    def merge_heads(t):
        return jnp.concatenate(jnp.split(t, H, axis=0), axis=-1).reshape(TB * L, E)

    qh = split_heads(q)                                      # (H*TB, L, dh)
    kh = split_heads(k)
    vh = split_heads(v)

    # scores: K consumed directly (no ks.T); scale already folded into Wq/bq.
    s = jnp.einsum('bld,bmd->blm', qh.astype(cdt), kh.astype(cdt),
                   preferred_element_type=jnp.float32)        # (H*TB, L, L)
    s = s - jnp.max(s, axis=-1, keepdims=True)
    p = jnp.exp(s)
    # softmax denominator on the EUP (otherwise idle) instead of a VPU divide.
    p = p * pl.reciprocal(jnp.sum(p, axis=-1, keepdims=True), approx=True)

    oh = jnp.einsum('blm,bmd->bld', p.astype(cdt), vh.astype(cdt),
                    preferred_element_type=jnp.float32)       # (H*TB, L, dh)

    # ONE full-E-contraction output projection on the whole (TB*L, E) slab.
    attn = merge_heads(oh)
    attn = jnp.dot(attn.astype(cdt), wo_ref[...],
                   preferred_element_type=jnp.float32) + bo_ref[...]

    # ---- residual + norm1 (f32 elementwise; safe on v5e too) ----------------------
    y = _layer_norm(x2 + attn, g1_ref[...], be1_ref[...])

    # ---- FFN: Linear -> ReLU -> Linear (weights pre-transposed wrapper-side) ------
    # TODO(synk): for realistic d_ff on v7x (64 MiB VMEM), tile w1/w2 along d_ff with
    # an extra 'arbitrary' grid axis instead of keeping both weights fully resident.
    h1 = jnp.dot(y.astype(cdt), w1_ref[...],
                 preferred_element_type=jnp.float32) + b1_ref[...]
    h1 = jnp.maximum(h1, 0.0)
    h2 = jnp.dot(h1.astype(cdt), w2_ref[...],
                 preferred_element_type=jnp.float32) + b2_ref[...]

    # ---- residual + norm2, lane-dense store (last dim = E) ------------------------
    out = _layer_norm(y + h2, g2_ref[...], be2_ref[...])
    out_ref[...] = out.astype(out_ref.dtype).reshape(TB, L, E)


def _pick_tb(n_batch, seq_len, max_rows=512):
    """Largest divisor of n_batch with tb*seq_len <= max_rows.

    Bigger blocks amortize the per-grid-step overhead and fill the MXU M dim.
    (At real scale also keep grid >= 2 steps so both v7x TensorCores are fed.)
    """
    best = 1
    for tb in range(1, n_batch + 1):
        if n_batch % tb == 0 and tb * seq_len <= max_rows:
            best = tb
    return best


@functools.partial(jax.jit, static_argnames=("n_heads", "matmul_dtype", "tb"))
def transformer_encoder(x_slb, params, n_heads, *, matmul_dtype=jnp.float32, tb=None):
    """x_slb: (seq, batch, d_model) float32, PyTorch MultiheadAttention layout.

    matmul_dtype: set to jnp.bfloat16 on v6e/v7x to feed the MXU bf16 operands
    (f32 accumulation is kept via preferred_element_type); keep f32 on v5e-exact runs.
    """
    L, N, E = x_slb.shape
    assert E % n_heads == 0, "d_model must be divisible by n_heads"
    dh = E // n_heads
    scale = 1.0 / math.sqrt(dh)

    x = jnp.transpose(x_slb, (1, 0, 2))                       # (N, L, E)

    # ---- one-time weight prep (plain XLA, outside the kernel, fused by jit) -------
    # Fused, pre-transposed QKV weight with 1/sqrt(dh) folded into the Q slice.
    wqkv = jnp.concatenate(
        [params["wq"] * scale, params["wk"], params["wv"]], axis=0).T     # (E, 3E)
    bqkv = jnp.concatenate(
        [params["bq"] * scale, params["bk"], params["bv"]], axis=-1)      # (1, 3E)
    woT = params["wo"].T                                                  # (E, E)
    w1T = params["w1"].T                                                  # (E, F)
    w2T = params["w2"].T                                                  # (F, E)

    mats = [
        wqkv.astype(matmul_dtype), bqkv,
        woT.astype(matmul_dtype), params["bo"],
        w1T.astype(matmul_dtype), params["b1"],
        w2T.astype(matmul_dtype), params["b2"],
        params["g1"], params["be1"], params["g2"], params["be2"],
    ]

    if tb is None:
        tb = _pick_tb(N, L)
    assert N % tb == 0

    # Loop-invariant weights/biases: constant index_map (no re-DMA across steps).
    # (pipeline_mode=pl.Buffered(1) on these specs is an option at large d_model/d_ff
    #  to avoid double-buffering constants; unnecessary at demo sizes.)
    def const_spec(p):
        return pl.BlockSpec(p.shape, lambda b: (0, 0))

    in_specs = [pl.BlockSpec((tb, L, E), lambda b: (b, 0, 0))]
    in_specs += [const_spec(p) for p in mats]

    out = pl.pallas_call(
        functools.partial(encoder_kernel, n_heads=n_heads),
        out_shape=jax.ShapeDtypeStruct((N, L, E), x.dtype),
        grid_spec=pltpu.PrefetchScalarGridSpec(
            num_scalar_prefetch=0,
            grid=(N // tb,),
            in_specs=in_specs,
            out_specs=pl.BlockSpec((tb, L, E), lambda b: (b, 0, 0)),
        ),
        compiler_params=pltpu.CompilerParams(
            dimension_semantics=("parallel",),
            vmem_limit_bytes=32 * 1024 * 1024,
        ),
    )(x, *mats)

    return jnp.transpose(out, (1, 0, 2))                      # back to (seq, batch, E)


def reference_encoder(x_slb, params, n_heads):
    """Pure-JAX reference mirroring PyTorch semantics."""
    L, N, E = x_slb.shape
    dh = E // n_heads
    x = jnp.transpose(x_slb, (1, 0, 2))                       # (N, L, E)

    def one(xb):
        q = xb @ params["wq"].T + params["bq"][0]
        k = xb @ params["wk"].T + params["bk"][0]
        v = xb @ params["wv"].T + params["bv"][0]
        heads = []
        for h in range(n_heads):
            qs, ks, vs = (t[:, h * dh:(h + 1) * dh] for t in (q, k, v))
            s = qs @ ks.T / math.sqrt(dh)
            p = jax.nn.softmax(s, axis=-1)
            heads.append(p @ vs)
        attn = jnp.concatenate(heads, axis=-1) @ params["wo"].T + params["bo"][0]
        y = _layer_norm(xb + attn, params["g1"][0], params["be1"][0])
        h1 = jax.nn.relu(y @ params["w1"].T + params["b1"][0])
        h2 = h1 @ params["w2"].T + params["b2"][0]
        return _layer_norm(y + h2, params["g2"][0], params["be2"][0])

    out = jax.vmap(one)(x)
    return jnp.transpose(out, (1, 0, 2))


def init_params(key, d_model, d_ff):
    ks = jax.random.split(key, 16)
    s = 0.1
    return {
        "wq": jax.random.normal(ks[0], (d_model, d_model), jnp.float32) * s,
        "wk": jax.random.normal(ks[1], (d_model, d_model), jnp.float32) * s,
        "wv": jax.random.normal(ks[2], (d_model, d_model), jnp.float32) * s,
        "bq": jax.random.normal(ks[3], (1, d_model), jnp.float32) * s,
        "bk": jax.random.normal(ks[4], (1, d_model), jnp.float32) * s,
        "bv": jax.random.normal(ks[5], (1, d_model), jnp.float32) * s,
        "wo": jax.random.normal(ks[6], (d_model, d_model), jnp.float32) * s,
        "bo": jax.random.normal(ks[7], (1, d_model), jnp.float32) * s,
        "w1": jax.random.normal(ks[8], (d_ff, d_model), jnp.float32) * s,
        "b1": jax.random.normal(ks[9], (1, d_ff), jnp.float32) * s,
        "w2": jax.random.normal(ks[10], (d_model, d_ff), jnp.float32) * s,
        "b2": jax.random.normal(ks[11], (1, d_model), jnp.float32) * s,
        "g1": jnp.ones((1, d_model), jnp.float32)
              + jax.random.normal(ks[12], (1, d_model), jnp.float32) * s,
        "be1": jax.random.normal(ks[13], (1, d_model), jnp.float32) * s,
        "g2": jnp.ones((1, d_model), jnp.float32)
              + jax.random.normal(ks[14], (1, d_model), jnp.float32) * s,
        "be2": jax.random.normal(ks[15], (1, d_model), jnp.float32) * s,
    }


if __name__ == "__main__":
    # d_model=128 keeps the output store lane-dense (full 128-lane last dim).
    SEQ, BATCH, D_MODEL, N_HEADS, D_FF = 8, 2, 128, 4, 256

    key = jax.random.PRNGKey(0)
    k_x, k_p = jax.random.split(key)
    x = jax.random.normal(k_x, (SEQ, BATCH, D_MODEL), jnp.float32)
    params = init_params(k_p, D_MODEL, D_FF)

    out = transformer_encoder(x, params, N_HEADS)             # f32 matmuls for exactness
    out = jax.block_until_ready(out)

    ref = reference_encoder(x, params, N_HEADS)
    assert out.shape == (SEQ, BATCH, D_MODEL)
    max_err = float(jnp.max(jnp.abs(out - ref)))
    assert jnp.allclose(out, ref, atol=3e-3, rtol=3e-3), \
        f"mismatch vs JAX reference (max abs err {max_err})"

    print("KERNEL_OK")
</pallas_src>

<mosaic_0001>
module attributes {stable_mosaic.version = 11 : i64} {
  func.func @encoder_kernel(%arg0: i32, %arg1: memref<2x8x128xf32, #tpu.memory_space<vmem>>, %arg2: memref<128x384xf32, #tpu.memory_space<vmem>>, %arg3: memref<1x384xf32, #tpu.memory_space<vmem>>, %arg4: memref<128x128xf32, #tpu.memory_space<vmem>>, %arg5: memref<1x128xf32, #tpu.memory_space<vmem>>, %arg6: memref<128x256xf32, #tpu.memory_space<vmem>>, %arg7: memref<1x256xf32, #tpu.memory_space<vmem>>, %arg8: memref<256x128xf32, #tpu.memory_space<vmem>>, %arg9: memref<1x128xf32, #tpu.memory_space<vmem>>, %arg10: memref<1x128xf32, #tpu.memory_space<vmem>>, %arg11: memref<1x128xf32, #tpu.memory_space<vmem>>, %arg12: memref<1x128xf32, #tpu.memory_space<vmem>>, %arg13: memref<1x128xf32, #tpu.memory_space<vmem>>, %arg14: memref<2x8x128xf32, #tpu.memory_space<vmem>>) attributes {dimension_semantics = [#tpu.dimension_semantics<parallel>], iteration_bounds = array<i64: 1>, scalar_prefetch = 0 : i64, scratch_operands = 0 : i64, tpu.core_type = #tpu.core_type<tc>, window_params = [{transform_indices = @transform_0, window_bounds = array<i64: 2, 8, 128>}, {pipeline_mode = #tpu.pipeline_mode<synchronous>, transform_indices = @transform_1, window_bounds = array<i64: 128, 384>}, {pipeline_mode = #tpu.pipeline_mode<synchronous>, transform_indices = @transform_2, window_bounds = array<i64: 1, 384>}, {pipeline_mode = #tpu.pipeline_mode<synchronous>, transform_indices = @transform_3, window_bounds = array<i64: 128, 128>}, {pipeline_mode = #tpu.pipeline_mode<synchronous>, transform_indices = @transform_4, window_bounds = array<i64: 1, 128>}, {pipeline_mode = #tpu.pipeline_mode<synchronous>, transform_indices = @transform_5, window_bounds = array<i64: 128, 256>}, {pipeline_mode = #tpu.pipeline_mode<synchronous>, transform_indices = @transform_6, window_bounds = array<i64: 1, 256>}, {pipeline_mode = #tpu.pipeline_mode<synchronous>, transform_indices = @transform_7, window_bounds = array<i64: 256, 128>}, {pipeline_mode = #tpu.pipeline_mode<synchronous>, transform_indices = @transform_8, window_bounds = array<i64: 1, 128>}, {pipeline_mode = #tpu.pipeline_mode<synchronous>, transform_indices = @transform_9, window_bounds = array<i64: 1, 128>}, {pipeline_mode = #tpu.pipeline_mode<synchronous>, transform_indices = @transform_10, window_bounds = array<i64: 1, 128>}, {pipeline_mode = #tpu.pipeline_mode<synchronous>, transform_indices = @transform_11, window_bounds = array<i64: 1, 128>}, {pipeline_mode = #tpu.pipeline_mode<synchronous>, transform_indices = @transform_12, window_bounds = array<i64: 1, 128>}, {transform_indices = @transform_13, window_bounds = array<i64: 2, 8, 128>}]} {
    %c0 = arith.constant 0 : index
    %c0_0 = arith.constant 0 : index
    %c0_1 = arith.constant 0 : index
    %0 = vector.load %arg1[%c0, %c0_0, %c0_1] : memref<2x8x128xf32, #tpu.memory_space<vmem>>, vector<2x8x128xf32>
    %1 = vector.shape_cast %0 : vector<2x8x128xf32> to vector<16x128xf32>
    %c0_2 = arith.constant 0 : index
    %c0_3 = arith.constant 0 : index
    %2 = vector.load %arg2[%c0_2, %c0_3] : memref<128x384xf32, #tpu.memory_space<vmem>>, vector<128x384xf32>
    %cst = arith.constant dense<0.000000e+00> : vector<16x384xf32>
    %3 = tpu.matmul %1, %2, %cst {dimension_numbers = #tpu.dot_dimension_numbers<[1], [0], [0], [1], [0, 0, 1, 1], [], []>} : vector<16x128xf32>, vector<128x384xf32>, vector<16x384xf32> -> vector<16x384xf32>
    %c0_4 = arith.constant 0 : index
    %c0_5 = arith.constant 0 : index
    %4 = vector.load %arg3[%c0_4, %c0_5] : memref<1x384xf32, #tpu.memory_space<vmem>>, vector<1x384xf32>
    %5 = vector.broadcast %4 : vector<1x384xf32> to vector<16x384xf32>
    %6 = arith.addf %3, %5 : vector<16x384xf32>
    %7 = vector.extract_strided_slice %6 {offsets = [0, 0], sizes = [16, 128], strides = [1, 1]} : vector<16x384xf32> to vector<16x128xf32>
    %8 = vector.extract_strided_slice %6 {offsets = [0, 128], sizes = [16, 128], strides = [1, 1]} : vector<16x384xf32> to vector<16x128xf32>
    %9 = vector.extract_strided_slice %6 {offsets = [0, 256], sizes = [16, 128], strides = [1, 1]} : vector<16x384xf32> to vector<16x128xf32>
    %10 = vector.shape_cast %7 : vector<16x128xf32> to vector<2x8x128xf32>
    %11 = vector.extract_strided_slice %10 {offsets = [0, 0, 0], sizes = [2, 8, 32], strides = [1, 1, 1]} : vector<2x8x128xf32> to vector<2x8x32xf32>
    %12 = vector.extract_strided_slice %10 {offsets = [0, 0, 32], sizes = [2, 8, 32], strides = [1, 1, 1]} : vector<2x8x128xf32> to vector<2x8x32xf32>
    %13 = vector.extract_strided_slice %10 {offsets = [0, 0, 64], sizes = [2, 8, 32], strides = [1, 1, 1]} : vector<2x8x128xf32> to vector<2x8x32xf32>
    %14 = vector.extract_strided_slice %10 {offsets = [0, 0, 96], sizes = [2, 8, 32], strides = [1, 1, 1]} : vector<2x8x128xf32> to vector<2x8x32xf32>
    %15 = tpu.concatenate %11, %12, %13, %14 in 0 : vector<2x8x32xf32>, vector<2x8x32xf32>, vector<2x8x32xf32>, vector<2x8x32xf32> -> vector<8x8x32xf32>
    %16 = vector.shape_cast %8 : vector<16x128xf32> to vector<2x8x128xf32>
    %17 = vector.extract_strided_slice %16 {offsets = [0, 0, 0], sizes = [2, 8, 32], strides = [1, 1, 1]} : vector<2x8x128xf32> to vector<2x8x32xf32>
    %18 = vector.extract_strided_slice %16 {offsets = [0, 0, 32], sizes = [2, 8, 32], strides = [1, 1, 1]} : vector<2x8x128xf32> to vector<2x8x32xf32>
    %19 = vector.extract_strided_slice %16 {offsets = [0, 0, 64], sizes = [2, 8, 32], strides = [1, 1, 1]} : vector<2x8x128xf32> to vector<2x8x32xf32>
    %20 = vector.extract_strided_slice %16 {offsets = [0, 0, 96], sizes = [2, 8, 32], strides = [1, 1, 1]} : vector<2x8x128xf32> to vector<2x8x32xf32>
    %21 = tpu.concatenate %17, %18, %19, %20 in 0 : vector<2x8x32xf32>, vector<2x8x32xf32>, vector<2x8x32xf32>, vector<2x8x32xf32> -> vector<8x8x32xf32>
    %22 = vector.shape_cast %9 : vector<16x128xf32> to vector<2x8x128xf32>
    %23 = vector.extract_strided_slice %22 {offsets = [0, 0, 0], sizes = [2, 8, 32], strides = [1, 1, 1]} : vector<2x8x128xf32> to vector<2x8x32xf32>
    %24 = vector.extract_strided_slice %22 {offsets = [0, 0, 32], sizes = [2, 8, 32], strides = [1, 1, 1]} : vector<2x8x128xf32> to vector<2x8x32xf32>
    %25 = vector.extract_strided_slice %22 {offsets = [0, 0, 64], sizes = [2, 8, 32], strides = [1, 1, 1]} : vector<2x8x128xf32> to vector<2x8x32xf32>
    %26 = vector.extract_strided_slice %22 {offsets = [0, 0, 96], sizes = [2, 8, 32], strides = [1, 1, 1]} : vector<2x8x128xf32> to vector<2x8x32xf32>
    %27 = tpu.concatenate %23, %24, %25, %26 in 0 : vector<2x8x32xf32>, vector<2x8x32xf32>, vector<2x8x32xf32>, vector<2x8x32xf32> -> vector<8x8x32xf32>
    "tpu.trace_start"() <{level = 10 : i32, message = "bld,bmd->blm"}> : () -> ()
    %cst_6 = arith.constant dense<0.000000e+00> : vector<8x8x8xf32>
    %28 = tpu.matmul %15, %21, %cst_6 {dimension_numbers = #tpu.dot_dimension_numbers<[2], [2], [1], [1], [0, 0, 0, 1, 1, 1], [0], [0]>} : vector<8x8x32xf32>, vector<8x8x32xf32>, vector<8x8x8xf32> -> vector<8x8x8xf32>
    "tpu.trace_stop"() : () -> ()
    %cst_7 = arith.constant dense<0xFF800000> : vector<8x8xf32>
    %29 = vector.multi_reduction <maximumf>, %28, %cst_7 [2] : vector<8x8x8xf32> to vector<8x8xf32>
    %30 = vector.shape_cast %29 : vector<8x8xf32> to vector<8x8x1xf32>
    %31 = vector.broadcast %30 : vector<8x8x1xf32> to vector<8x8x8xf32>
    %32 = arith.subf %28, %31 : vector<8x8x8xf32>
    %33 = math.exp %32 : vector<8x8x8xf32>
    %cst_8 = arith.constant dense<0.000000e+00> : vector<8x8xf32>
    %34 = vector.multi_reduction <add>, %33, %cst_8 [2] : vector<8x8x8xf32> to vector<8x8xf32>
    %35 = vector.shape_cast %34 : vector<8x8xf32> to vector<8x8x1xf32>
    %36 = tpu.reciprocal %35 {approx = true} : vector<8x8x1xf32> -> vector<8x8x1xf32>
    %37 = vector.broadcast %36 : vector<8x8x1xf32> to vector<8x8x8xf32>
    %38 = arith.mulf %33, %37 : vector<8x8x8xf32>
    "tpu.trace_start"() <{level = 10 : i32, message = "blm,bmd->bld"}> : () -> ()
    %cst_9 = arith.constant dense<0.000000e+00> : vector<8x8x32xf32>
    %39 = tpu.matmul %38, %27, %cst_9 {dimension_numbers = #tpu.dot_dimension_numbers<[2], [1], [1], [2], [0, 0, 0, 1, 1, 2], [0], [0]>} : vector<8x8x8xf32>, vector<8x8x32xf32>, vector<8x8x32xf32> -> vector<8x8x32xf32>
    "tpu.trace_stop"() : () -> ()
    %40 = vector.extract_strided_slice %39 {offsets = [0, 0, 0], sizes = [2, 8, 32], strides = [1, 1, 1]} : vector<8x8x32xf32> to vector<2x8x32xf32>
    %41 = vector.extract_strided_slice %39 {offsets = [2, 0, 0], sizes = [2, 8, 32], strides = [1, 1, 1]} : vector<8x8x32xf32> to vector<2x8x32xf32>
    %42 = vector.extract_strided_slice %39 {offsets = [4, 0, 0], sizes = [2, 8, 32], strides = [1, 1, 1]} : vector<8x8x32xf32> to vector<2x8x32xf32>
    %43 = vector.extract_strided_slice %39 {offsets = [6, 0, 0], sizes = [2, 8, 32], strides = [1, 1, 1]} : vector<8x8x32xf32> to vector<2x8x32xf32>
    %44 = tpu.concatenate %40, %41, %42, %43 in 2 : vector<2x8x32xf32>, vector<2x8x32xf32>, vector<2x8x32xf32>, vector<2x8x32xf32> -> vector<2x8x128xf32>
    %45 = vector.shape_cast %44 : vector<2x8x128xf32> to vector<16x128xf32>
    %c0_10 = arith.constant 0 : index
    %c0_11 = arith.constant 0 : index
    %46 = vector.load %arg4[%c0_10, %c0_11] : memref<128x128xf32, #tpu.memory_space<vmem>>, vector<128x128xf32>
    %cst_12 = arith.constant dense<0.000000e+00> : vector<16x128xf32>
    %47 = tpu.matmul %45, %46, %cst_12 {dimension_numbers = #tpu.dot_dimension_numbers<[1], [0], [0], [1], [0, 0, 1, 1], [], []>} : vector<16x128xf32>, vector<128x128xf32>, vector<16x128xf32> -> vector<16x128xf32>
    %c0_13 = arith.constant 0 : index
    %c0_14 = arith.constant 0 : index
    %48 = vector.load %arg5[%c0_13, %c0_14] : memref<1x128xf32, #tpu.memory_space<vmem>>, vector<1x128xf32>
    %49 = vector.broadcast %48 : vector<1x128xf32> to vector<16x128xf32>
    %50 = arith.addf %47, %49 : vector<16x128xf32>
    %51 = arith.addf %1, %50 : vector<16x128xf32>
    %c0_15 = arith.constant 0 : index
    %c0_16 = arith.constant 0 : index
    %52 = vector.load %arg10[%c0_15, %c0_16] : memref<1x128xf32, #tpu.memory_space<vmem>>, vector<1x128xf32>
    %c0_17 = arith.constant 0 : index
    %c0_18 = arith.constant 0 : index
    %53 = vector.load %arg11[%c0_17, %c0_18] : memref<1x128xf32, #tpu.memory_space<vmem>>, vector<1x128xf32>
    %cst_19 = arith.constant dense<0.000000e+00> : vector<16xf32>
    %54 = vector.multi_reduction <add>, %51, %cst_19 [1] : vector<16x128xf32> to vector<16xf32>
    %55 = vector.shape_cast %54 : vector<16xf32> to vector<16x1xf32>
    %cst_20 = arith.constant 1.280000e+02 : f32
    %56 = vector.broadcast %cst_20 : f32 to vector<16x1xf32>
    %57 = arith.divf %55, %56 : vector<16x1xf32>
    %58 = vector.broadcast %57 : vector<16x1xf32> to vector<16x128xf32>
    %59 = arith.subf %51, %58 : vector<16x128xf32>
    %60 = arith.mulf %59, %59 : vector<16x128xf32>
    %cst_21 = arith.constant dense<0.000000e+00> : vector<16xf32>
    %61 = vector.multi_reduction <add>, %60, %cst_21 [1] : vector<16x128xf32> to vector<16xf32>
    %62 = vector.shape_cast %61 : vector<16xf32> to vector<16x1xf32>
    %cst_22 = arith.constant 1.280000e+02 : f32
    %63 = vector.broadcast %cst_22 : f32 to vector<16x1xf32>
    %64 = arith.divf %62, %63 : vector<16x1xf32>
    %65 = vector.broadcast %57 : vector<16x1xf32> to vector<16x128xf32>
    %66 = arith.subf %51, %65 : vector<16x128xf32>
    %cst_23 = arith.constant 9.99999974E-6 : f32
    %67 = vector.broadcast %cst_23 : f32 to vector<16x1xf32>
    %68 = arith.addf %64, %67 : vector<16x1xf32>
    %69 = math.rsqrt %68 : vector<16x1xf32>
    %70 = vector.broadcast %69 : vector<16x1xf32> to vector<16x128xf32>
    %71 = arith.mulf %66, %70 : vector<16x128xf32>
    %72 = vector.broadcast %52 : vector<1x128xf32> to vector<16x128xf32>
    %73 = arith.mulf %71, %72 : vector<16x128xf32>
    %74 = vector.broadcast %53 : vector<1x128xf32> to vector<16x128xf32>
    %75 = arith.addf %73, %74 : vector<16x128xf32>
    %c0_24 = arith.constant 0 : index
    %c0_25 = arith.constant 0 : index
    %76 = vector.load %arg6[%c0_24, %c0_25] : memref<128x256xf32, #tpu.memory_space<vmem>>, vector<128x256xf32>
    %cst_26 = arith.constant dense<0.000000e+00> : vector<16x256xf32>
    %77 = tpu.matmul %75, %76, %cst_26 {dimension_numbers = #tpu.dot_dimension_numbers<[1], [0], [0], [1], [0, 0, 1, 1], [], []>} : vector<16x128xf32>, vector<128x256xf32>, vector<16x256xf32> -> vector<16x256xf32>
    %c0_27 = arith.constant 0 : index
    %c0_28 = arith.constant 0 : index
    %78 = vector.load %arg7[%c0_27, %c0_28] : memref<1x256xf32, #tpu.memory_space<vmem>>, vector<1x256xf32>
    %79 = vector.broadcast %78 : vector<1x256xf32> to vector<16x256xf32>
    %80 = arith.addf %77, %79 : vector<16x256xf32>
    %cst_29 = arith.constant 0.000000e+00 : f32
    %81 = vector.broadcast %cst_29 : f32 to vector<16x256xf32>
    %82 = arith.maximumf %80, %81 : vector<16x256xf32>
    %c0_30 = arith.constant 0 : index
    %c0_31 = arith.constant 0 : index
    %83 = vector.load %arg8[%c0_30, %c0_31] : memref<256x128xf32, #tpu.memory_space<vmem>>, vector<256x128xf32>
    %cst_32 = arith.constant dense<0.000000e+00> : vector<16x128xf32>
    %84 = tpu.matmul %82, %83, %cst_32 {dimension_numbers = #tpu.dot_dimension_numbers<[1], [0], [0], [1], [0, 0, 1, 1], [], []>} : vector<16x256xf32>, vector<256x128xf32>, vector<16x128xf32> -> vector<16x128xf32>
    %c0_33 = arith.constant 0 : index
    %c0_34 = arith.constant 0 : index
    %85 = vector.load %arg9[%c0_33, %c0_34] : memref<1x128xf32, #tpu.memory_space<vmem>>, vector<1x128xf32>
    %86 = vector.broadcast %85 : vector<1x128xf32> to vector<16x128xf32>
    %87 = arith.addf %84, %86 : vector<16x128xf32>
    %88 = arith.addf %75, %87 : vector<16x128xf32>
    %c0_35 = arith.constant 0 : index
    %c0_36 = arith.constant 0 : index
    %89 = vector.load %arg12[%c0_35, %c0_36] : memref<1x128xf32, #tpu.memory_space<vmem>>, vector<1x128xf32>
    %c0_37 = arith.constant 0 : index
    %c0_38 = arith.constant 0 : index
    %90 = vector.load %arg13[%c0_37, %c0_38] : memref<1x128xf32, #tpu.memory_space<vmem>>, vector<1x128xf32>
    %cst_39 = arith.constant dense<0.000000e+00> : vector<16xf32>
    %91 = vector.multi_reduction <add>, %88, %cst_39 [1] : vector<16x128xf32> to vector<16xf32>
    %92 = vector.shape_cast %91 : vector<16xf32> to vector<16x1xf32>
    %cst_40 = arith.constant 1.280000e+02 : f32
    %93 = vector.broadcast %cst_40 : f32 to vector<16x1xf32>
    %94 = arith.divf %92, %93 : vector<16x1xf32>
    %95 = vector.broadcast %94 : vector<16x1xf32> to vector<16x128xf32>
    %96 = arith.subf %88, %95 : vector<16x128xf32>
    %97 = arith.mulf %96, %96 : vector<16x128xf32>
    %cst_41 = arith.constant dense<0.000000e+00> : vector<16xf32>
    %98 = vector.multi_reduction <add>, %97, %cst_41 [1] : vector<16x128xf32> to vector<16xf32>
    %99 = vector.shape_cast %98 : vector<16xf32> to vector<16x1xf32>
    %cst_42 = arith.constant 1.280000e+02 : f32
    %100 = vector.broadcast %cst_42 : f32 to vector<16x1xf32>
    %101 = arith.divf %99, %100 : vector<16x1xf32>
    %102 = vector.broadcast %94 : vector<16x1xf32> to vector<16x128xf32>
    %103 = arith.subf %88, %102 : vector<16x128xf32>
    %cst_43 = arith.constant 9.99999974E-6 : f32
    %104 = vector.broadcast %cst_43 : f32 to vector<16x1xf32>
    %105 = arith.addf %101, %104 : vector<16x1xf32>
    %106 = math.rsqrt %105 : vector<16x1xf32>
    %107 = vector.broadcast %106 : vector<16x1xf32> to vector<16x128xf32>
    %108 = arith.mulf %103, %107 : vector<16x128xf32>
    %109 = vector.broadcast %89 : vector<1x128xf32> to vector<16x128xf32>
    %110 = arith.mulf %108, %109 : vector<16x128xf32>
    %111 = vector.broadcast %90 : vector<1x128xf32> to vector<16x128xf32>
    %112 = arith.addf %110, %111 : vector<16x128xf32>
    %113 = vector.shape_cast %112 : vector<16x128xf32> to vector<2x8x128xf32>
    %c0_44 = arith.constant 0 : index
    %c0_45 = arith.constant 0 : index
    %c0_46 = arith.constant 0 : index
    %114 = vector.load %arg14[%c0_44, %c0_45, %c0_46] : memref<2x8x128xf32, #tpu.memory_space<vmem>>, vector<2x8x128xf32>
    tpu.vector_store %arg14[%c0_44, %c0_45, %c0_46], %113 {strides = array<i32>} : memref<2x8x128xf32, #tpu.memory_space<vmem>>, vector<2x8x128xf32>,
    return
  }
  func.func @transform_0(%arg0: i32) -> (i32, i32, i32) {
    %c0_i32 = arith.constant 0 : i32
    %c0_i32_0 = arith.constant 0 : i32
    %c0_i32_1 = arith.constant 0 : i32
    return %arg0, %c0_i32, %c0_i32_0 : i32, i32, i32
  }
  func.func @transform_1(%arg0: i32) -> (i32, i32) {
    %c0_i32 = arith.constant 0 : i32
    %c0_i32_0 = arith.constant 0 : i32
    %c0_i32_1 = arith.constant 0 : i32
    return %c0_i32, %c0_i32_0 : i32, i32
  }
  func.func @transform_2(%arg0: i32) -> (i32, i32) {
    %c0_i32 = arith.constant 0 : i32
    %c0_i32_0 = arith.constant 0 : i32
    %c0_i32_1 = arith.constant 0 : i32
    return %c0_i32, %c0_i32_0 : i32, i32
  }
  func.func @transform_3(%arg0: i32) -> (i32, i32) {
    %c0_i32 = arith.constant 0 : i32
    %c0_i32_0 = arith.constant 0 : i32
    %c0_i32_1 = arith.constant 0 : i32
    return %c0_i32, %c0_i32_0 : i32, i32
  }
  func.func @transform_4(%arg0: i32) -> (i32, i32) {
    %c0_i32 = arith.constant 0 : i32
    %c0_i32_0 = arith.constant 0 : i32
    %c0_i32_1 = arith.constant 0 : i32
    return %c0_i32, %c0_i32_0 : i32, i32
  }
  func.func @transform_5(%arg0: i32) -> (i32, i32) {
    %c0_i32 = arith.constant 0 : i32
    %c0_i32_0 = arith.constant 0 : i32
    %c0_i32_1 = arith.constant 0 : i32
    return %c0_i32, %c0_i32_0 : i32, i32
  }
  func.func @transform_6(%arg0: i32) -> (i32, i32) {
    %c0_i32 = arith.constant 0 : i32
    %c0_i32_0 = arith.constant 0 : i32
    %c0_i32_1 = arith.constant 0 : i32
    return %c0_i32, %c0_i32_0 : i32, i32
  }
  func.func @transform_7(%arg0: i32) -> (i32, i32) {
    %c0_i32 = arith.constant 0 : i32
    %c0_i32_0 = arith.constant 0 : i32
    %c0_i32_1 = arith.constant 0 : i32
    return %c0_i32, %c0_i32_0 : i32, i32
  }
  func.func @transform_8(%arg0: i32) -> (i32, i32) {
    %c0_i32 = arith.constant 0 : i32
    %c0_i32_0 = arith.constant 0 : i32
    %c0_i32_1 = arith.constant 0 : i32
    return %c0_i32, %c0_i32_0 : i32, i32
  }
  func.func @transform_9(%arg0: i32) -> (i32, i32) {
    %c0_i32 = arith.constant 0 : i32
    %c0_i32_0 = arith.constant 0 : i32
    %c0_i32_1 = arith.constant 0 : i32
    return %c0_i32, %c0_i32_0 : i32, i32
  }
  func.func @transform_10(%arg0: i32) -> (i32, i32) {
    %c0_i32 = arith.constant 0 : i32
    %c0_i32_0 = arith.constant 0 : i32
    %c0_i32_1 = arith.constant 0 : i32
    return %c0_i32, %c0_i32_0 : i32, i32
  }
  func.func @transform_11(%arg0: i32) -> (i32, i32) {
    %c0_i32 = arith.constant 0 : i32
    %c0_i32_0 = arith.constant 0 : i32
    %c0_i32_1 = arith.constant 0 : i32
    return %c0_i32, %c0_i32_0 : i32, i32
  }
  func.func @transform_12(%arg0: i32) -> (i32, i32) {
    %c0_i32 = arith.constant 0 : i32
    %c0_i32_0 = arith.constant 0 : i32
    %c0_i32_1 = arith.constant 0 : i32
    return %c0_i32, %c0_i32_0 : i32, i32
  }
  func.func @transform_13(%arg0: i32) -> (i32, i32, i32) {
    %c0_i32 = arith.constant 0 : i32
    %c0_i32_0 = arith.constant 0 : i32
    %c0_i32_1 = arith.constant 0 : i32
    return %arg0, %c0_i32, %c0_i32_0 : i32, i32, i32
  }
}

</mosaic_0001>

<bundles_post_ra>
// kernel: transformer_encoder.1
= control target key start
LH: loop header
LB: loop body
LE: loop exit
PB: predicated region body
PF: predicated region fallthrough
CT: control target
= control target key end

     0   :  { %vm219_vm0 = vcmask 261120   ;;  %s1127_s27 = smov 64   ;;  %vm412_vm1 = vcmask 64512   ;;  %vm711_vm2 = vcmask 523264   ;;  %vm714_vm3 = vcmask 785408   ;;  %s1745_s1 = inlined_call_operand.vmem [shape: f32[128,384], index: 1, kind: input, shape index: {}]   ;;  %s1746_s0 = inlined_call_operand.vmem [shape: f32[2,8,128], index: 0, kind: input, shape index: {}]   ;;  %s1747_s2 = inlined_call_operand.vmem [shape: f32[1,384], index: 2, kind: input, shape index: {}]   ;;  %s1748_s4 = inlined_call_operand.vmem [shape: f32[1,128], index: 4, kind: input, shape index: {}]   ;;  %s1749_s3 = inlined_call_operand.vmem [shape: f32[128,128], index: 3, kind: input, shape index: {}]   ;;  %s1750_s5 = inlined_call_operand.vmem [shape: f32[128,256], index: 5, kind: input, shape index: {}]   ;;  %s1751_s9 = inlined_call_operand.vmem [shape: f32[1,128], index: 9, kind: input, shape index: {}]   ;;  %s1752_s10 = inlined_call_operand.vmem [shape: f32[1,128], index: 10, kind: input, shape index: {}]   ;;  %s1753_s7 = inlined_call_operand.vmem [shape: f32[256,128], index: 7, kind: input, shape index: {}]   ;;  %s1754_s8 = inlined_call_operand.vmem [shape: f32[1,128], index: 8, kind: input, shape index: {}]   ;;  %s1755_s6 = inlined_call_operand.vmem [shape: f32[1,256], index: 6, kind: input, shape index: {}]   ;;  %s1756_s11 = inlined_call_operand.vmem [shape: f32[1,128], index: 11, kind: input, shape index: {}]   ;;  %s1757_s12 = inlined_call_operand.vmem [shape: f32[1,128], index: 12, kind: input, shape index: {}]   ;;  %s1758_s13 = inlined_call_operand.vmem [shape: f32[2,8,128], index: 13, kind: output, shape index: {}]  }
   0x1   :  { %v92_v0 = vld [vmem:[%s1745_s1 + $0x170] sm:$0xff]  ;;  %v89_v1 = vld [vmem:[%s1745_s1 + $0x158] sm:$0xff]  ;;  %v91_v2 = vld [vmem:[%s1745_s1 + $0x168] sm:$0xff] }
   0x2   :  { %125 = vmatpush.msra.mxu1 %v92_v0  ;;  %102 = vmatpush.msra.mxu0 %v91_v2  ;;  %v88_v3 = vld [vmem:[%s1745_s1 + $0x150] sm:$0xff]  ;;  %v86_v4 = vld [vmem:[%s1745_s1 + $0x140] sm:$0xff]  ;;  %v85_v5 = vld [vmem:[%s1745_s1 + $0x138] sm:$0xff] }
   0x3   :  { %v83_v6 = vld [vmem:[%s1745_s1 + $0x128] sm:$0xff]  ;;  %v82_v7 = vld [vmem:[%s1745_s1 + $0x120] sm:$0xff]  ;;  %v80_v8 = vld [vmem:[%s1745_s1 + $0x110] sm:$0xff] }
   0x4   :  { %126 = vmatpush.msra.mxu1 %v89_v1  ;;  %103 = vmatpush.msra.mxu0 %v88_v3  ;;  %v79_v9 = vld [vmem:[%s1745_s1 + $0x108] sm:$0xff]  ;;  %v77_v10 = vld [vmem:[%s1745_s1 + $0xf8] sm:$0xff]  ;;  %v76_v11 = vld [vmem:[%s1745_s1 + $0xf0] sm:$0xff] }
   0x5   :  { %v74_v12 = vld [vmem:[%s1745_s1 + $0xe0] sm:$0xff]  ;;  %v73_v13 = vld [vmem:[%s1745_s1 + $0xd8] sm:$0xff]  ;;  %v71_v14 = vld [vmem:[%s1745_s1 + $0xc8] sm:$0xff] }
   0x6   :  { %127 = vmatpush.msra.mxu1 %v86_v4  ;;  %104 = vmatpush.msra.mxu0 %v85_v5  ;;  %v70_v15 = vld [vmem:[%s1745_s1 + $0xc0] sm:$0xff]  ;;  %v68_v16 = vld [vmem:[%s1745_s1 + $0xb0] sm:$0xff]  ;;  %v67_v17 = vld [vmem:[%s1745_s1 + $0xa8] sm:$0xff] }
   0x7   :  { %v65_v18 = vld [vmem:[%s1745_s1 + $0x98] sm:$0xff]  ;;  %v64_v19 = vld [vmem:[%s1745_s1 + $0x90] sm:$0xff]  ;;  %v62_v20 = vld [vmem:[%s1745_s1 + $0x80] sm:$0xff] }
   0x8   :  { %128 = vmatpush.msra.mxu1 %v83_v6  ;;  %105 = vmatpush.msra.mxu0 %v82_v7  ;;  %v61_v21 = vld [vmem:[%s1745_s1 + $0x78] sm:$0xff]  ;;  %v59_v22 = vld [vmem:[%s1745_s1 + $0x68] sm:$0xff]  ;;  %v58_v23 = vld [vmem:[%s1745_s1 + $0x60] sm:$0xff] }
   0x9   :  { %v56_v24 = vld [vmem:[%s1745_s1 + $0x50] sm:$0xff]  ;;  %v55_v25 = vld [vmem:[%s1745_s1 + $0x48] sm:$0xff]  ;;  %v53_v26 = vld [vmem:[%s1745_s1 + $0x38] sm:$0xff] }
   0xa   :  { %129 = vmatpush.msra.mxu1 %v80_v8  ;;  %106 = vmatpush.msra.mxu0 %v79_v9  ;;  %v52_v27 = vld [vmem:[%s1745_s1 + $0x30] sm:$0xff]  ;;  %v50_v28 = vld [vmem:[%s1745_s1 + $0x20] sm:$0xff]  ;;  %v49_v29 = vld [vmem:[%s1745_s1 + $0x18] sm:$0xff] }
   0xb   :  { %v47_v30 = vld [vmem:[%s1745_s1 + $0x8] sm:$0xff]  ;;  %v46_v31 = vld [vmem:[%s1745_s1] sm:$0xff]  ;;  %v93_v49 = vld [vmem:[%s1745_s1 + $0x178] sm:$0xff] }
   0xc   :  { %130 = vmatpush.msra.mxu1 %v77_v10  ;;  %107 = vmatpush.msra.mxu0 %v76_v11  ;;  %v1300_v32 = vld [vmem:[%s1746_s0] sm:$0xff]  ;;  %v1307_v33 = vld [vmem:[%s1746_s0 + $0x8] sm:$0xff]  ;;  %s1128_s0 = smov 96   ;;  %v84_v53 = vld [vmem:[%s1745_s1 + $0x130] sm:$0xff] }
   0xd   :  { %v1314_v34 = vld [vmem:[%s1747_s2] sm:$0x7]  ;;  %s1129_s2 = smov 32   ;;  %148 = vmatpush.msra.mxu2 %v93_v49  ;;  %v87_v51 = vld [vmem:[%s1745_s1 + $0x148] sm:$0xff]  ;;  %v81_v55 = vld [vmem:[%s1745_s1 + $0x118] sm:$0xff] }
   0xe   :  { %131 = vmatpush.msra.mxu1 %v74_v12  ;;  %108 = vmatpush.msra.mxu0 %v73_v13  ;;  %v97_v35 = vperm.slane %v1314_v34, 1  ;;  %v96_v36 = vperm.slane %v1314_v34, 0  ;;  %v90_v50 = vld [vmem:[%s1745_s1 + $0x160] sm:$0xff]  ;;  %v75_v57 = vld [vmem:[%s1745_s1 + $0xe8] sm:$0xff]  ;;  %v72_v59 = vld [vmem:[%s1745_s1 + $0xd0] sm:$0xff] }
   0xf   :  { %149 = vmatpush.msra.mxu2 %v90_v50  ;;  %v78_v56 = vld [vmem:[%s1745_s1 + $0x100] sm:$0xff]  ;;  %v69_v61 = vld [vmem:[%s1745_s1 + $0xb8] sm:$0xff]  ;;  %v63_v1 = vld [vmem:[%s1745_s1 + $0x88] sm:$0xff] }
  0x10   :  { %132 = vmatpush.msra.mxu1 %v71_v14  ;;  %109 = vmatpush.msra.mxu0 %v70_v15  ;;  %v66_v62 = vld [vmem:[%s1745_s1 + $0xa0] sm:$0xff]  ;;  %v60_v3 = vld [vmem:[%s1745_s1 + $0x70] sm:$0xff]  ;;  %v57_v5 = vld [vmem:[%s1745_s1 + $0x58] sm:$0xff] }
  0x11   :  { %150 = vmatpush.msra.mxu2 %v87_v51  ;;  %v54_v6 = vld [vmem:[%s1745_s1 + $0x40] sm:$0xff]  ;;  %v51_v9 = vld [vmem:[%s1745_s1 + $0x28] sm:$0xff]  ;;  %v48_v11 = vld [vmem:[%s1745_s1 + $0x10] sm:$0xff] }
  0x12   :  { %133 = vmatpush.msra.mxu1 %v68_v16  ;;  %110 = vmatpush.msra.mxu0 %v67_v17 }
  0x13   :  { %151 = vmatpush.msra.mxu2 %v84_v53 }
  0x14   :  { %134 = vmatpush.msra.mxu1 %v65_v18  ;;  %111 = vmatpush.msra.mxu0 %v64_v19 }
  0x15   :  { %152 = vmatpush.msra.mxu2 %v81_v55 }
  0x16   :  { %135 = vmatpush.msra.mxu1 %v62_v20  ;;  %112 = vmatpush.msra.mxu0 %v61_v21 }
  0x17   :  { %153 = vmatpush.msra.mxu2 %v78_v56 }
  0x18   :  { %136 = vmatpush.msra.mxu1 %v59_v22  ;;  %113 = vmatpush.msra.mxu0 %v58_v23 }
  0x19   :  { %154 = vmatpush.msra.mxu2 %v75_v57 }
  0x1a   :  { %137 = vmatpush.msra.mxu1 %v56_v24  ;;  %114 = vmatpush.msra.mxu0 %v55_v25 }
  0x1b   :  { %155 = vmatpush.msra.mxu2 %v72_v59 }
  0x1c   :  { %138 = vmatpush.msra.mxu1 %v53_v26  ;;  %115 = vmatpush.msra.mxu0 %v52_v27 }
  0x1d   :  { %156 = vmatpush.msra.mxu2 %v69_v61 }
  0x1e   :  { %139 = vmatpush.msra.mxu1 %v50_v28  ;;  %116 = vmatpush.msra.mxu0 %v49_v29 }
  0x1f   :  { %157 = vmatpush.msra.mxu2 %v66_v62 }
  0x20   :  { %140 = vmatpush.msra.mxu1 %v47_v30  ;;  %117 = vmatpush.msra.mxu0 %v46_v31  ;;  %v98_v30 = vperm.slane %v1314_v34, 2 }
  0x21   :  { %141 = vmatmul.f32.vlgmr.msra.gmra.mxu1 %v1300_v32  ;;  %118 = vmatmul.f32.vlgmr.msra.gmra.mxu0 %v1300_v32 }
  0x22   :  { %158 = vmatpush.msra.mxu2 %v63_v1 }
  0x24   :  { %159 = vmatpush.msra.mxu2 %v60_v3 }
  0x26   :  { %160 = vmatpush.msra.mxu2 %v57_v5 }
  0x28   :  { %161 = vmatpush.msra.mxu2 %v54_v6 }
  0x29   :  { %144 = vmatmul.f32.gmra.mxu1 %v1307_v33  ;;  %121 = vmatmul.f32.gmra.mxu0 %v1307_v33 }
  0x2a   :  { %162 = vmatpush.msra.mxu2 %v51_v9 }
  0x2c   :  { %163 = vmatpush.msra.mxu2 %v48_v11 }
  0x2d   :  { %164 = vmatmul.f32.vlgmr.msra.gmra.mxu2 %v1300_v32 }
  0x35   :  { %167 = vmatmul.f32.gmra.mxu2 %v1307_v33 }
  0x9e   :  { %v142_v37 = vpop.f32.mrf.mxu1  ;;  %v119_v38 = vpop.f32.mrf.mxu0 }
  0x9f   :  { %v143_v39 = vadd.f32 %v142_v37, %v97_v35  ;;  %v120_v40 = vadd.f32 %v119_v38, %v96_v36 }
  0xa1   :  { %191 = vrot.lane.b32.xlu2 %v143_v39, %s1127_s27  ;;  %187 = vrot.lane.b32.xlu0 %v143_v39, %s1128_s0 }
  0xa2   :  { %1051 = vmatpush.xpose.msk.msra.mxu3 %vm219_vm0, %v143_v39 }
  0xa5   :  { %1052 = vmatmul.msk.f32.vlgmr.msra.gmra.mxu3 %vm219_vm0, %v120_v40 }
  0xa6   :  { %v145_v41 = vpop.f32.mrf.mxu1  ;;  %v122_v42 = vpop.f32.mrf.mxu0 }
  0xa7   :  { %v146_v43 = vadd.f32 %v145_v41, %v97_v35  ;;  %v123_v44 = vadd.f32 %v122_v42, %v96_v36 }
  0xa9   :  { %189 = vrot.lane.b32.xlu1 %v146_v43, %s1128_s0  ;;  %1053 = vmatpush.xpose.msk.msrb.mxu3 %vm219_vm0, %v146_v43 }
  0xaa   :  { %177 = vrot.lane.b32.xlu2 %v120_v40, %s1127_s27  ;;  %173 = vrot.lane.b32.xlu0 %v120_v40, %s1128_s0 }
  0xad   :  { %1054 = vmatmul.msk.f32.vlgmr.msrb.gmra.mxu3 %vm219_vm0, %v123_v44 }
  0xb0   :  { %v165_v36 = vpop.f32.mrf.mxu2 }
  0xb1   :  { %175 = vrot.lane.b32.xlu1 %v123_v44, %s1128_s0  ;;  %v166_v37 = vadd.f32 %v165_v36, %v98_v30 }
  0xb2   :  { %195 = vrot.lane.b32.xlu2 %v143_v39, %s1129_s2  ;;  %193 = vrot.lane.b32.xlu0 %v146_v43, %s1127_s27 }
  0xb9   :  { %179 = vrot.lane.b32.xlu1 %v123_v44, %s1127_s27 }
  0xba   :  { %183 = vrot.lane.b32.xlu2 %v123_v44, %s1129_s2  ;;  %181 = vrot.lane.b32.xlu0 %v120_v40, %s1129_s2 }
  0xc1   :  { %197 = vrot.lane.b32.xlu1 %v146_v43, %s1129_s2  ;;  %v168_v43 = vpop.f32.mrf.mxu2 }
  0xfb   :  { %v192_v45 = vpop.permute.xlu2 %191 }
 0x104   :  { %v178_v46 = vpop.permute.xlu2 %177 }
 0x10c   :  { %v196_v47 = vpop.permute.xlu2 %195 }
 0x10d   :  { %1063 = vmatpush.xpose.msk.msrb.mxu0 %vm219_vm0, %v196_v47 }
 0x113   :  { %v188_v48 = vpop.permute.xlu0 %187 }
 0x114   :  { %1055 = vmatpush.xpose.msk.msra.mxu3 %vm219_vm0, %v188_v48  ;;  %v184_v12 = vpop.permute.xlu2 %183 }
 0x11b   :  { %v190_v52 = vpop.permute.xlu1 %189 }
 0x11c   :  { %v174_v54 = vpop.permute.xlu0 %173  ;;  %1057 = vmatpush.xpose.msk.msrb.mxu3 %vm219_vm0, %v190_v52 }
 0x11d   :  { %1056 = vmatmul.msk.f32.vlgmr.msra.gmra.mxu3 %vm219_vm0, %v174_v54 }
 0x120   :  { %1059 = vmatpush.xpose.msk.msra.mxu3 %vm219_vm0, %v192_v45  ;;  %v169_v45 = vadd.f32 %v168_v43, %v98_v30 }
 0x123   :  { %v176_v58 = vpop.permute.xlu1 %175 }
 0x124   :  { %v194_v60 = vpop.permute.xlu0 %193 }
 0x125   :  { %1058 = vmatmul.msk.f32.vlgmr.msrb.gmra.mxu3 %vm219_vm0, %v176_v58 }
 0x126   :  { %1061 = vmatpush.xpose.msk.msrb.mxu3 %vm219_vm0, %v194_v60 }
 0x128   :  { %v241_v63 = vpop.f32.mrf.mxu3 }
 0x129   :  { %v413_v0 = vsel %vm412_vm1, %v241_v63, -inf }
 0x12a   :  { %414 = vmax.xlane.f32.xlu1 %v413_v0 }
 0x12b   :  { %v180_v2 = vpop.permute.xlu1 %179 }
 0x12c   :  { %v182_v4 = vpop.permute.xlu0 %181 }
 0x12d   :  { %1060 = vmatmul.msk.f32.vlgmr.msra.gmra.mxu3 %vm219_vm0, %v178_v46  ;;  %1064 = vmatmul.msk.f32.vlgmr.msrb.gmra.mxu0 %vm219_vm0, %v182_v4 }
 0x12e   :  { %519 = vmatpush.msra.mxu3 %v166_v37 }
 0x130   :  { %v265_v7 = vpop.f32.mrf.mxu3 }
 0x131   :  { %v416_v8 = vsel %vm412_vm1, %v265_v7, -inf }
 0x132   :  { %417 = vmax.xlane.f32.xlu2 %v416_v8 }
 0x133   :  { %v198_v10 = vpop.permute.xlu1 %197 }
 0x134   :  { %1065 = vmatpush.xpose.msk.msrb.mxu1 %vm219_vm0, %v198_v10 }
 0x135   :  { %1062 = vmatmul.msk.f32.vlgmr.msrb.gmra.mxu3 %vm219_vm0, %v180_v2 }
 0x136   :  { %542 = vmatpush.msrb.mxu3 %v169_v45 }
 0x137   :  { %1066 = vmatmul.msk.f32.vlgmr.msrb.gmra.mxu1 %vm219_vm0, %v184_v12 }
 0x19d   :  { %v415_v13 = vpop.xlane.xlu1 %414 }
 0x19e   :  { %v437_v14 = vsub.f32 %v241_v63, %v415_v13 }
 0x1a0   :  { %v445_v15 = vmul.f32 1.442695, %v437_v14  ;;  %v289_v16 = vpop.f32.mrf.mxu3 }
 0x1a1   :  { %v419_v17 = vsel %vm412_vm1, %v289_v16, -inf }
 0x1a2   :  { %1085 = vpow2.f32 %v445_v15  ;;  %420 = vmax.xlane.f32.xlu0 %v419_v17 }
 0x1a5   :  { %v418_v23 = vpop.xlane.xlu2 %417 }
 0x1a6   :  { %v438_v24 = vsub.f32 %v265_v7, %v418_v23 }
 0x1a8   :  { %v1086_v18 = vpop.eup %1085  ;;  %v313_v19 = vpop.f32.mrf.mxu3  ;;  %v447_v27 = vmul.f32 1.442695, %v438_v24 }
 0x1a9   :  { %v461_v20 = vsel %vm412_vm1, %v1086_v18, 0.0  ;;  %v422_v38 = vsel %vm412_vm1, %v313_v19, -inf }
 0x1aa   :  { %v385_v21 = vpop.f32.mrf.mxu0  ;;  %462 = vadd.xlane.f32.xlu2 %v461_v20  ;;  %1087 = vpow2.f32 %v447_v27 }
 0x1ab   :  { %v431_v22 = vsel %vm412_vm1, %v385_v21, -inf }
 0x1ac   :  { %432 = vmax.xlane.f32.xlu1 %v431_v22 }
 0x1b0   :  { %v337_v25 = vpop.f32.mrf.mxu3  ;;  %v1088_v39 = vpop.eup %1087 }
 0x1b1   :  { %v425_v26 = vsel %vm412_vm1, %v337_v25, -inf  ;;  %v464_v40 = vsel %vm412_vm1, %v1088_v39, 0.0 }
 0x1b2   :  { %426 = vmax.xlane.f32.xlu2 %v425_v26 }
 0x1b4   :  { %v1402_v28 = vpop.f32.mrf.mxu1 }
 0x1b5   :  { %v434_v29 = vsel %vm412_vm1, %v1402_v28, -inf }
 0x1b6   :  { %435 = vmax.xlane.f32.xlu0 %v434_v29 }
 0x1b8   :  { %v361_v31 = vpop.f32.mrf.mxu3 }
 0x1b9   :  { %v428_v35 = vsel %vm412_vm1, %v361_v31, -inf }
 0x1ba   :  { %429 = vmax.xlane.f32.xlu2 %v428_v35 }
 0x1be   :  { %423 = vmax.xlane.f32.xlu0 %v422_v38 }
 0x1c2   :  { %465 = vadd.xlane.f32.xlu2 %v464_v40 }
 0x1d2   :  { %207 = vrot.lane.b32.xlu0 %v166_v37, %s1127_s27 }
 0x215   :  { %v421_v41 = vpop.xlane.xlu0 %420 }
 0x216   :  { %v439_v42 = vsub.f32 %v289_v16, %v421_v41 }
 0x218   :  { %v449_v34 = vmul.f32 1.442695, %v439_v42 }
 0x21a   :  { %1089 = vpow2.f32 %v449_v34 }
 0x21d   :  { %v463_v44 = vpop.xlane.xlu2 %462 }
 0x21e   :  { %1091 = vrcp.f32 %v463_v44 }
 0x21f   :  { %v433_v46 = vpop.xlane.xlu1 %432 }
 0x220   :  { %v1090_v47 = vpop.eup %1089  ;;  %v443_v48 = vsub.f32 %v385_v21, %v433_v46 }
 0x221   :  { %v467_v49 = vsel %vm412_vm1, %v1090_v47, 0.0 }
 0x222   :  { %v457_v50 = vmul.f32 1.442695, %v443_v48  ;;  %468 = vadd.xlane.f32.xlu1 %v467_v49  ;;  %v732_v48 = vld [vmem:[%s1749_s3 + $0x78] sm:$0xff]  ;;  %v731_v49 = vld [vmem:[%s1749_s3 + $0x70] sm:$0xff] }
 0x223   :  { %737 = vmatpush.msrb.mxu2 %v732_v48  ;;  %v837_v48 = vld [vmem:[%s1750_s5 + $0x80] sm:$0xff] }
 0x224   :  { %v1092_v51 = vpop.eup %1091  ;;  %1093 = vpow2.f32 %v457_v50  ;;  %v730_v50 = vld [vmem:[%s1749_s3 + $0x68] sm:$0xff] }
 0x225   :  { %v493_v52 = vmul.f32 %v1092_v51, %v1086_v18  ;;  %v427_v53 = vpop.xlane.xlu2 %426  ;;  %738 = vmatpush.msrb.mxu2 %v731_v49  ;;  %v729_v51 = vld [vmem:[%s1749_s3 + $0x60] sm:$0xff]  ;;  %v838_v49 = vld [vmem:[%s1750_s5 + $0x88] sm:$0xff] }
 0x226   :  { %v441_v62 = vsub.f32 %v337_v25, %v427_v53  ;;  %v727_v53 = vld [vmem:[%s1749_s3 + $0x50] sm:$0xff] }
 0x227   :  { %1067 = vmatmul.msk.f32.vlgmr.msra.gmra.mxu3 %vm412_vm1, %v493_v52  ;;  %739 = vmatpush.msrb.mxu2 %v730_v50  ;;  %v728_v52 = vld [vmem:[%s1749_s3 + $0x58] sm:$0xff]  ;;  %v835_v50 = vld [vmem:[%s1750_s5 + $0x70] sm:$0xff] }
 0x228   :  { %v453_v2 = vmul.f32 1.442695, %v441_v62  ;;  %v718_v62 = vld [vmem:[%s1749_s3 + $0x8] sm:$0xff] }
 0x229   :  { %v436_v54 = vpop.xlane.xlu0 %435  ;;  %740 = vmatpush.msrb.mxu2 %v729_v51  ;;  %v836_v51 = vld [vmem:[%s1750_s5 + $0x78] sm:$0xff] }
 0x22a   :  { %v1413_v55 = vpop.eup %1093  ;;  %v444_v10 = vsub.f32 %v1402_v28, %v436_v54  ;;  %v726_v54 = vld [vmem:[%s1749_s3 + $0x48] sm:$0xff] }
 0x22b   :  { %v479_v56 = vsel %vm412_vm1, %v1413_v55, 0.0  ;;  %741 = vmatpush.msrb.mxu2 %v728_v52  ;;  %v833_v52 = vld [vmem:[%s1750_s5 + $0x60] sm:$0xff] }
 0x22c   :  { %480 = vadd.xlane.f32.xlu2 %v479_v56  ;;  %v459_v11 = vmul.f32 1.442695, %v444_v10  ;;  %v724_v56 = vld [vmem:[%s1749_s3 + $0x38] sm:$0xff] }
 0x22d   :  { %v430_v57 = vpop.xlane.xlu2 %429  ;;  %742 = vmatpush.msrb.mxu2 %v727_v53  ;;  %v834_v53 = vld [vmem:[%s1750_s5 + $0x68] sm:$0xff] }
 0x22e   :  { %v442_v58 = vsub.f32 %v361_v31, %v430_v57  ;;  %v723_v57 = vld [vmem:[%s1749_s3 + $0x30] sm:$0xff] }
 0x22f   :  { %743 = vmatpush.msrb.mxu2 %v726_v54  ;;  %v831_v54 = vld [vmem:[%s1750_s5 + $0x50] sm:$0xff] }
 0x230   :  { %v455_v59 = vmul.f32 1.442695, %v442_v58  ;;  %v722_v58 = vld [vmem:[%s1749_s3 + $0x28] sm:$0xff] }
 0x231   :  { %v424_v60 = vpop.xlane.xlu0 %423 }
 0x232   :  { %1095 = vpow2.f32 %v455_v59  ;;  %v440_v61 = vsub.f32 %v313_v19, %v424_v60  ;;  %v721_v59 = vld [vmem:[%s1749_s3 + $0x20] sm:$0xff]  ;;  %v720_v60 = vld [vmem:[%s1749_s3 + $0x18] sm:$0xff] }
 0x234   :  { %v451_v63 = vmul.f32 1.442695, %v440_v61  ;;  %v719_v61 = vld [vmem:[%s1749_s3 + $0x10] sm:$0xff] }
 0x235   :  { %v466_v0 = vpop.xlane.xlu2 %465 }
 0x236   :  { %1097 = vpow2.f32 %v451_v63  ;;  %v717_v63 = vld [vmem:[%s1749_s3] sm:$0xff] }
 0x237   :  { %1099 = vrcp.f32 %v466_v0 }
 0x238   :  { %v1096_v1 = vpop.eup %1095  ;;  %1101 = vpow2.f32 %v453_v2 }
 0x239   :  { %v476_v3 = vsel %vm412_vm1, %v1096_v1, 0.0  ;;  %1103 = vpow2.f32 %v459_v11 }
 0x23a   :  { %477 = vadd.xlane.f32.xlu2 %v476_v3 }
 0x23b   :  { %201 = vrot.lane.b32.xlu1 %v166_v37, %s1128_s0 }
 0x23c   :  { %v1098_v4 = vpop.eup %1097 }
 0x23d   :  { %v1100_v5 = vpop.eup %1099  ;;  %v470_v6 = vsel %vm412_vm1, %v1098_v4, 0.0 }
 0x23e   :  { %v494_v7 = vmul.f32 %v1100_v5, %v1088_v39  ;;  %471 = vadd.xlane.f32.xlu0 %v470_v6  ;;  %v1102_v8 = vpop.eup %1101 }
 0x23f   :  { %v473_v9 = vsel %vm412_vm1, %v1102_v8, 0.0  ;;  %v1104_v12 = vpop.eup %1103 }
 0x240   :  { %1068 = vmatmul.msk.f32.vlgmr.msrb.gmra.mxu3 %vm412_vm1, %v494_v7  ;;  %v482_v13 = vsel %vm412_vm1, %v1104_v12, 0.0 }
 0x244   :  { %v208_v16 = vpop.permute.xlu0 %207 }
 0x246   :  { %474 = vadd.xlane.f32.xlu0 %v473_v9 }
 0x252   :  { %203 = vrot.lane.b32.xlu2 %v169_v45, %s1128_s0 }
 0x25a   :  { %213 = vrot.lane.b32.xlu0 %v166_v37, %s1129_s2 }
 0x262   :  { %209 = vrot.lane.b32.xlu0 %v169_v45, %s1127_s27 }
 0x265   :  { %483 = vadd.xlane.f32.xlu1 %v482_v13 }
 0x26a   :  { %215 = vrot.lane.b32.xlu0 %v169_v45, %s1129_s2 }
 0x295   :  { %v469_v14 = vpop.xlane.xlu1 %468 }
 0x296   :  { %1105 = vrcp.f32 %v469_v14 }
 0x29c   :  { %v1106_v17 = vpop.eup %1105 }
 0x29d   :  { %v495_v18 = vmul.f32 %v1106_v17, %v1090_v47 }
 0x29f   :  { %v481_v15 = vpop.xlane.xlu2 %480 }
 0x2aa   :  { %v521_v43 = vpop.f32.mrf.mxu3 }
 0x2ad   :  { %v202_v19 = vpop.permute.xlu1 %201  ;;  %v478_v20 = vpop.xlane.xlu2 %477 }
 0x2ae   :  { %565 = vmatpush.msra.mxu0 %v202_v19  ;;  %v1130_v19 = vmov 128.0  }
 0x2af   :  { %1069 = vmatmul.msk.f32.vlgmr.msra.gmra.mxu0 %vm412_vm1, %v495_v18 }
 0x2b0   :  { %611 = vmatpush.msrb.mxu0 %v208_v16 }
 0x2b1   :  { %v472_v21 = vpop.xlane.xlu0 %471 }
 0x2b2   :  { %1107 = vrcp.f32 %v472_v21 }
 0x2b5   :  { %v204_v22 = vpop.permute.xlu2 %203 }
 0x2b6   :  { %588 = vmatpush.msra.mxu1 %v204_v22 }
 0x2b8   :  { %v1108_v23 = vpop.eup %1107 }
 0x2b9   :  { %v496_v24 = vmul.f32 %v1108_v23, %v1098_v4  ;;  %v475_v25 = vpop.xlane.xlu0 %474 }
 0x2ba   :  { %1109 = vrcp.f32 %v475_v25 }
 0x2bb   :  { %1070 = vmatmul.msk.f32.vlgmr.msra.gmra.mxu1 %vm412_vm1, %v496_v24  ;;  %1111 = vrcp.f32 %v481_v15 }
 0x2bc   :  { %1113 = vrcp.f32 %v478_v20 }
 0x2c0   :  { %v1110_v26 = vpop.eup %1109 }
 0x2c1   :  { %v497_v27 = vmul.f32 %v1110_v26, %v1102_v8  ;;  %v1112_v28 = vpop.eup %1111 }
 0x2c2   :  { %v499_v29 = vmul.f32 %v1112_v28, %v1413_v55  ;;  %v1114_v31 = vpop.eup %1113  ;;  %v725_v55 = vld [vmem:[%s1749_s3 + $0x40] sm:$0xff] }
 0x2c3   :  { %1071 = vmatmul.msk.f32.vlgmr.msrb.gmra.mxu0 %vm412_vm1, %v497_v27  ;;  %v498_v35 = vmul.f32 %v1114_v31, %v1096_v1  ;;  %v544_v45 = vpop.f32.mrf.mxu3  ;;  %744 = vmatpush.msrb.mxu2 %v725_v55  ;;  %v849_v27 = vld [vmem:[%s1750_s5 + $0xe0] sm:$0xff]  ;;  %v832_v55 = vld [vmem:[%s1750_s5 + $0x58] sm:$0xff] }
 0x2c5   :  { %745 = vmatpush.msrb.mxu2 %v724_v56  ;;  %v829_v56 = vld [vmem:[%s1750_s5 + $0x40] sm:$0xff] }
 0x2c7   :  { %746 = vmatpush.msrb.mxu2 %v723_v57  ;;  %v830_v57 = vld [vmem:[%s1750_s5 + $0x48] sm:$0xff] }
 0x2c9   :  { %747 = vmatpush.msrb.mxu2 %v722_v58  ;;  %v827_v58 = vld [vmem:[%s1750_s5 + $0x30] sm:$0xff] }
 0x2cb   :  { %748 = vmatpush.msrb.mxu2 %v721_v59  ;;  %v828_v59 = vld [vmem:[%s1750_s5 + $0x38] sm:$0xff] }
 0x2cc   :  { %v214_v30 = vpop.permute.xlu0 %213 }
 0x2cd   :  { %657 = vmatpush.msra.mxu0 %v214_v30  ;;  %749 = vmatpush.msrb.mxu2 %v720_v60  ;;  %v825_v60 = vld [vmem:[%s1750_s5 + $0x20] sm:$0xff] }
 0x2ce   :  { %1073 = vmatmul.msk.f32.vlgmr.msra.gmra.mxu0 %vm412_vm1, %v499_v29  ;;  %v850_v29 = vld [vmem:[%s1750_s5 + $0xe8] sm:$0xff] }
 0x2cf   :  { %750 = vmatpush.msrb.mxu2 %v719_v61  ;;  %v826_v61 = vld [vmem:[%s1750_s5 + $0x28] sm:$0xff] }
 0x2d1   :  { %751 = vmatpush.msrb.mxu2 %v718_v62  ;;  %v823_v62 = vld [vmem:[%s1750_s5 + $0x10] sm:$0xff] }
 0x2d3   :  { %752 = vmatpush.msrb.mxu2 %v717_v63  ;;  %v824_v63 = vld [vmem:[%s1750_s5 + $0x18] sm:$0xff] }
 0x2d4   :  { %v210_v36 = vpop.permute.xlu0 %209 }
 0x2d5   :  { %634 = vmatpush.msra.mxu3 %v210_v36 }
 0x2d6   :  { %1072 = vmatmul.msk.f32.vlgmr.msra.gmra.mxu3 %vm412_vm1, %v498_v35 }
 0x2d8   :  { %v484_v37 = vpop.xlane.xlu1 %483 }
 0x2d9   :  { %1115 = vrcp.f32 %v484_v37 }
 0x2da   :  { %1117 = vrcp.f32 %v1130_v19  ;;  %v938_v19 = vld [vmem:[%s1753_s7 + $0xe8] sm:$0xff] }
 0x2dc   :  { %v216_v38 = vpop.permute.xlu0 %215 }
 0x2dd   :  { %680 = vmatpush.msrb.mxu1 %v216_v38 }
 0x2df   :  { %v1116_v39 = vpop.eup %1115 }
 0x2e0   :  { %v500_v40 = vmul.f32 %v1116_v39, %v1104_v12  ;;  %v1079_v12 = vld [vmem:[%s1748_s4] ss:$0 sm:$0xff]  ;;  %v1118_v20 = vpop.eup %1117  ;;  %v847_v39 = vld [vmem:[%s1750_s5 + $0xd0] sm:$0xff] }
 0x2e1   :  { %v769_v21 = vmul.f32 128.0, %v1118_v20  ;;  %vm773_vm4 = vweird.f32 %v1118_v20 }
 0x2e2   :  { %1074 = vmatmul.msk.f32.vlgmr.msrb.gmra.mxu1 %vm412_vm1, %v500_v40  ;;  %v848_v40 = vld [vmem:[%s1750_s5 + $0xd8] sm:$0xff] }
 0x2e3   :  { %v770_v22 = vsub.f32 1.0, %v769_v21 }
 0x2e5   :  { %v771_v23 = vmul.f32 %v1118_v20, %v770_v22  ;;  %v922_v22 = vld [vmem:[%s1753_s7 + $0x68] sm:$0xff] }
 0x2e7   :  { %v772_v24 = vadd.f32 %v1118_v20, %v771_v23 }
 0x2e9   :  { %v1496_v25 = vsel %vm773_vm4, %v1118_v20, %v772_v24 }
 0x32c   :  { %v567_v41 = vpop.f32.mrf.mxu0 }
 0x32d   :  { %687 = vrot.lane.b32.xlu2 %v567_v41, %s1129_s2  ;;  %v845_v41 = vld [vmem:[%s1750_s5 + $0xc0] sm:$0xff] }
 0x338   :  { %v590_v42 = vpop.f32.mrf.mxu1 }
 0x339   :  { %689 = vrot.lane.b32.xlu1 %v590_v42, %s1129_s2  ;;  %v846_v42 = vld [vmem:[%s1750_s5 + $0xc8] sm:$0xff] }
 0x340   :  { %v613_v34 = vpop.f32.mrf.mxu0 }
 0x341   :  { %695 = vrot.lane.b32.xlu0 %v613_v34, %s1127_s27  ;;  %v843_v34 = vld [vmem:[%s1750_s5 + $0xb0] sm:$0xff] }
 0x34b   :  { %v659_v44 = vpop.f32.mrf.mxu0 }
 0x34c   :  { %703 = vrot.lane.b32.xlu2 %v659_v44, %s1128_s0  ;;  %v841_v44 = vld [vmem:[%s1750_s5 + $0xa0] sm:$0xff] }
 0x359   :  { %v636_v46 = vpop.f32.mrf.mxu3 }
 0x35a   :  { %697 = vrot.lane.b32.xlu0 %v636_v46, %s1127_s27  ;;  %v839_v46 = vld [vmem:[%s1750_s5 + $0x90] sm:$0xff] }
 0x35f   :  { %v682_v47 = vpop.f32.mrf.mxu1 }
 0x360   :  { %705 = vrot.lane.b32.xlu2 %v682_v47, %s1128_s0  ;;  %v840_v47 = vld [vmem:[%s1750_s5 + $0x98] sm:$0xff] }
 0x387   :  { %v688_v0 = vpop.permute.xlu2 %687 }
 0x388   :  { %v709_v1 = vsel %vm219_vm0, %v521_v43, %v688_v0  ;;  %v844_v43 = vld [vmem:[%s1750_s5 + $0xb8] sm:$0xff]  ;;  %v821_v0 = vld [vmem:[%s1750_s5] sm:$0xff] }
 0x3a6   :  { %v704_v3 = vpop.permute.xlu2 %703 }
 0x3ab   :  { %v690_v6 = vpop.permute.xlu1 %689 }
 0x3ac   :  { %v710_v7 = vsel %vm219_vm0, %v544_v45, %v690_v6  ;;  %v842_v45 = vld [vmem:[%s1750_s5 + $0xa8] sm:$0xff] }
 0x3b3   :  { %v696_v2 = vpop.permute.xlu0 %695 }
 0x3b4   :  { %v712_v4 = vsel %vm711_vm2, %v709_v1, %v696_v2  ;;  %v822_v1 = vld [vmem:[%s1750_s5 + $0x8] sm:$0xff] }
 0x3b5   :  { %v715_v5 = vsel %vm714_vm3, %v712_v4, %v704_v3 }
 0x3b6   :  { %753 = vmatmul.f32.vlgmr.msrb.gmra.mxu2 %v715_v5 }
 0x3ba   :  { %v706_v9 = vpop.permute.xlu2 %705 }
 0x3cc   :  { %v698_v8 = vpop.permute.xlu0 %697 }
 0x3cd   :  { %v713_v10 = vsel %vm711_vm2, %v710_v7, %v698_v8 }
 0x3ce   :  { %v716_v11 = vsel %vm714_vm3, %v713_v10, %v706_v9 }
 0x3cf   :  { %756 = vmatmul.f32.gmra.mxu2 %v716_v11  ;;  %v1608_v11 = vld [vmem:[%s1751_s9] ss:$0 sm:$0xff] }
 0x439   :  { %v754_v13 = vpop.f32.mrf.mxu2 }
 0x43a   :  { %v755_v14 = vadd.f32 %v1079_v12, %v754_v13  ;;  %v940_v13 = vld [vmem:[%s1753_s7 + $0xf8] sm:$0xff] }
 0x43b   :  { %968 = vmatpush.msra.mxu2 %v940_v13 }
 0x43c   :  { %v760_v15 = vadd.f32 %v755_v14, %v1300_v32  ;;  %v851_v32 = vld [vmem:[%s1750_s5 + $0xf0] sm:$0xff] }
 0x43d   :  { %859 = vmatpush.msrb.mxu3 %v851_v32  ;;  %v939_v14 = vld [vmem:[%s1753_s7 + $0xf0] sm:$0xff]  ;;  %v921_v32 = vld [vmem:[%s1753_s7 + $0x60] sm:$0xff] }
 0x43e   :  { %764 = vadd.xlane.f32.xlu0 %v760_v15  ;;  %969 = vmatpush.msra.mxu2 %v939_v14  ;;  %v1082_v14 = vld [vmem:[%s1754_s8] ss:$0 sm:$0xff] }
 0x43f   :  { %860 = vmatpush.msrb.mxu3 %v849_v27  ;;  %v936_v27 = vld [vmem:[%s1753_s7 + $0xd8] sm:$0xff] }
 0x440   :  { %970 = vmatpush.msra.mxu2 %v938_v19 }
 0x441   :  { %861 = vmatpush.msrb.mxu3 %v847_v39 }
 0x443   :  { %862 = vmatpush.msrb.mxu3 %v845_v41  ;;  %v932_v41 = vld [vmem:[%s1753_s7 + $0xb8] sm:$0xff] }
 0x445   :  { %863 = vmatpush.msrb.mxu3 %v843_v34 }
 0x447   :  { %864 = vmatpush.msrb.mxu3 %v841_v44  ;;  %v915_v44 = vld [vmem:[%s1753_s7 + $0x30] sm:$0xff] }
 0x449   :  { %865 = vmatpush.msrb.mxu3 %v839_v46  ;;  %v930_v46 = vld [vmem:[%s1753_s7 + $0xa8] sm:$0xff] }
 0x44b   :  { %866 = vmatpush.msrb.mxu3 %v837_v48  ;;  %v929_v48 = vld [vmem:[%s1753_s7 + $0xa0] sm:$0xff] }
 0x44d   :  { %867 = vmatpush.msrb.mxu3 %v835_v50  ;;  %v928_v50 = vld [vmem:[%s1753_s7 + $0x98] sm:$0xff] }
 0x44f   :  { %868 = vmatpush.msrb.mxu3 %v833_v52 }
 0x451   :  { %869 = vmatpush.msrb.mxu3 %v831_v54 }
 0x452   :  { %v757_v16 = vpop.f32.mrf.mxu2 }
 0x453   :  { %v758_v17 = vadd.f32 %v1079_v12, %v757_v16  ;;  %870 = vmatpush.msrb.mxu3 %v829_v56  ;;  %v1620_v16 = vld [vmem:[%s1752_s10] ss:$0 sm:$0xff]  ;;  %v927_v56 = vld [vmem:[%s1753_s7 + $0x90] sm:$0xff] }
 0x455   :  { %v761_v18 = vadd.f32 %v758_v17, %v1307_v33  ;;  %v852_v33 = vld [vmem:[%s1750_s5 + $0xf8] sm:$0xff]  ;;  %871 = vmatpush.msrb.mxu3 %v827_v58 }
 0x456   :  { %882 = vmatpush.msrb.mxu0 %v852_v33  ;;  %v924_v17 = vld [vmem:[%s1753_s7 + $0x78] sm:$0xff] }
 0x457   :  { %766 = vadd.xlane.f32.xlu2 %v761_v18  ;;  %872 = vmatpush.msrb.mxu3 %v825_v60  ;;  %v912_v58 = vld [vmem:[%s1753_s7 + $0x18] sm:$0xff]  ;;  %v911_v60 = vld [vmem:[%s1753_s7 + $0x10] sm:$0xff] }
 0x458   :  { %883 = vmatpush.msrb.mxu0 %v850_v29  ;;  %945 = vmatpush.msra.mxu1 %v924_v17  ;;  %v935_v29 = vld [vmem:[%s1753_s7 + $0xd0] sm:$0xff] }
 0x459   :  { %873 = vmatpush.msrb.mxu3 %v823_v62  ;;  %v909_v62 = vld [vmem:[%s1753_s7] sm:$0xff] }
 0x45a   :  { %884 = vmatpush.msrb.mxu0 %v848_v40 }
 0x45b   :  { %874 = vmatpush.msrb.mxu3 %v821_v0 }
 0x45c   :  { %885 = vmatpush.msrb.mxu0 %v846_v42  ;;  %v916_v42 = vld [vmem:[%s1753_s7 + $0x38] sm:$0xff] }
 0x45e   :  { %886 = vmatpush.msrb.mxu0 %v844_v43  ;;  %v931_v43 = vld [vmem:[%s1753_s7 + $0xb0] sm:$0xff] }
 0x460   :  { %887 = vmatpush.msrb.mxu0 %v842_v45 }
 0x462   :  { %888 = vmatpush.msrb.mxu0 %v840_v47 }
 0x464   :  { %889 = vmatpush.msrb.mxu0 %v838_v49 }
 0x466   :  { %890 = vmatpush.msrb.mxu0 %v836_v51 }
 0x468   :  { %891 = vmatpush.msrb.mxu0 %v834_v53 }
 0x46a   :  { %892 = vmatpush.msrb.mxu0 %v832_v55  ;;  %v914_v55 = vld [vmem:[%s1753_s7 + $0x28] sm:$0xff] }
 0x46c   :  { %893 = vmatpush.msrb.mxu0 %v830_v57  ;;  %v926_v57 = vld [vmem:[%s1753_s7 + $0x88] sm:$0xff] }
 0x46e   :  { %894 = vmatpush.msrb.mxu0 %v828_v59  ;;  %v925_v59 = vld [vmem:[%s1753_s7 + $0x80] sm:$0xff] }
 0x470   :  { %895 = vmatpush.msrb.mxu0 %v826_v61  ;;  %v910_v61 = vld [vmem:[%s1753_s7 + $0x8] sm:$0xff] }
 0x472   :  { %896 = vmatpush.msrb.mxu0 %v824_v63  ;;  %v853_v63 = vld [vmem:[%s1755_s6] sm:$0x3] }
 0x473   :  { %v856_v0 = vperm.slane %v853_v63, 1 }
 0x474   :  { %897 = vmatpush.msrb.mxu0 %v822_v1 }
 0x4b1   :  { %v765_v26 = vpop.xlane.xlu0 %764 }
 0x4b2   :  { %v775_v28 = vmul.f32 %v1496_v25, %v765_v26  ;;  %v937_v26 = vld [vmem:[%s1753_s7 + $0xe0] sm:$0xff] }
 0x4b3   :  { %971 = vmatpush.msra.mxu2 %v937_v26 }
 0x4b4   :  { %v1511_v30 = vsub.f32 %v760_v15, %v775_v28  ;;  %v920_v28 = vld [vmem:[%s1753_s7 + $0x58] sm:$0xff] }
 0x4b5   :  { %972 = vmatpush.msra.mxu2 %v936_v27 }
 0x4b6   :  { %v779_v31 = vmul.f32 %v1511_v30, %v1511_v30 }
 0x4b7   :  { %973 = vmatpush.msra.mxu2 %v935_v29 }
 0x4b8   :  { %781 = vadd.xlane.f32.xlu1 %v779_v31  ;;  %v934_v31 = vld [vmem:[%s1753_s7 + $0xc8] sm:$0xff] }
 0x4b9   :  { %974 = vmatpush.msra.mxu2 %v934_v31 }
 0x4ca   :  { %v767_v35 = vpop.xlane.xlu2 %766 }
 0x4cb   :  { %v776_v36 = vmul.f32 %v1496_v25, %v767_v35  ;;  %v918_v35 = vld [vmem:[%s1753_s7 + $0x48] sm:$0xff] }
 0x4cd   :  { %v1516_v37 = vsub.f32 %v761_v18, %v776_v36  ;;  %v923_v18 = vld [vmem:[%s1753_s7 + $0x70] sm:$0xff]  ;;  %v933_v36 = vld [vmem:[%s1753_s7 + $0xc0] sm:$0xff] }
 0x4ce   :  { %946 = vmatpush.msra.mxu1 %v923_v18  ;;  %975 = vmatpush.msra.mxu2 %v933_v36 }
 0x4cf   :  { %v780_v38 = vmul.f32 %v1516_v37, %v1516_v37 }
 0x4d0   :  { %947 = vmatpush.msra.mxu1 %v922_v22  ;;  %976 = vmatpush.msra.mxu2 %v932_v41 }
 0x4d1   :  { %783 = vadd.xlane.f32.xlu0 %v780_v38  ;;  %v917_v38 = vld [vmem:[%s1753_s7 + $0x40] sm:$0xff] }
 0x4d2   :  { %948 = vmatpush.msra.mxu1 %v921_v32  ;;  %977 = vmatpush.msra.mxu2 %v931_v43 }
 0x4d4   :  { %949 = vmatpush.msra.mxu1 %v920_v28  ;;  %978 = vmatpush.msra.mxu2 %v930_v46  ;;  %v1084_v46 = vld [vmem:[%s1757_s12] ss:$0 sm:$0xff] }
 0x4d6   :  { %979 = vmatpush.msra.mxu2 %v929_v48 }
 0x4d8   :  { %980 = vmatpush.msra.mxu2 %v928_v50 }
 0x4da   :  { %981 = vmatpush.msra.mxu2 %v927_v56 }
 0x4dc   :  { %982 = vmatpush.msra.mxu2 %v926_v57 }
 0x4de   :  { %983 = vmatpush.msra.mxu2 %v925_v59 }
 0x52b   :  { %v782_v2 = vpop.xlane.xlu1 %781 }
 0x52c   :  { %v785_v3 = vmul.f32 %v782_v2, %v1496_v25 }
 0x52e   :  { %v787_v4 = vadd.f32 1e-05, %v785_v3 }
 0x530   :  { %1119 = vrsqrt.f32 %v787_v4  ;;  %vm795_vm6 = vweird.f32 %v787_v4 }
 0x536   :  { %v1120_v5 = vpop.eup %1119 }
 0x537   :  { %v790_v6 = vmul.f32 %v1120_v5, %v787_v4  ;;  %vm796_vm5 = vweird.f32 %v1120_v5  ;;  %v855_v4 = vperm.slane %v853_v63, 0 }
 0x538   :  { %vm797_vm7 = vmor %vm795_vm6, %vm796_vm5 }
 0x539   :  { %v791_v7 = vmul.f32 %v1120_v5, %v790_v6 }
 0x53b   :  { %v792_v8 = vmul.f32 0.5, %v791_v7 }
 0x53d   :  { %v793_v9 = vsub.f32 1.5, %v792_v8 }
 0x53f   :  { %v794_v10 = vmul.f32 %v1120_v5, %v793_v9 }
 0x541   :  { %v798_v12 = vsel %vm797_vm7, %v1120_v5, %v794_v10 }
 0x542   :  { %v809_v15 = vmul.f32 %v798_v12, %v1511_v30  ;;  %v919_v30 = vld [vmem:[%s1753_s7 + $0x50] sm:$0xff] }
 0x543   :  { %950 = vmatpush.msra.mxu1 %v919_v30 }
 0x544   :  { %v784_v20 = vpop.xlane.xlu0 %783  ;;  %v814_v21 = vmul.f32 %v1608_v11, %v809_v15 }
 0x545   :  { %v786_v23 = vmul.f32 %v784_v20, %v1496_v25  ;;  %951 = vmatpush.msra.mxu1 %v918_v35 }
 0x546   :  { %v1637_v24 = vadd.f32 %v1620_v16, %v814_v21 }
 0x547   :  { %v788_v33 = vadd.f32 1e-05, %v786_v23  ;;  %952 = vmatpush.msra.mxu1 %v917_v38 }
 0x548   :  { %875 = vmatmul.f32.vlgmr.msrb.gmra.mxu3 %v1637_v24  ;;  %898 = vmatmul.f32.vlgmr.msrb.gmra.mxu0 %v1637_v24 }
 0x549   :  { %1121 = vrsqrt.f32 %v788_v33  ;;  %953 = vmatpush.msra.mxu1 %v916_v42  ;;  %vm805_vm9 = vweird.f32 %v788_v33 }
 0x54b   :  { %954 = vmatpush.msra.mxu1 %v915_v44  ;;  %v1083_v44 = vld [vmem:[%s1756_s11] ss:$0 sm:$0xff] }
 0x54d   :  { %955 = vmatpush.msra.mxu1 %v914_v55 }
 0x54f   :  { %v1122_v39 = vpop.eup %1121 }
 0x550   :  { %v800_v40 = vmul.f32 %v1122_v39, %v788_v33  ;;  %vm806_vm8 = vweird.f32 %v1122_v39 }
 0x551   :  { %vm807_vm10 = vmor %vm805_vm9, %vm806_vm8 }
 0x552   :  { %v801_v34 = vmul.f32 %v1122_v39, %v800_v40 }
 0x554   :  { %v802_v45 = vmul.f32 0.5, %v801_v34 }
 0x556   :  { %v803_v47 = vsub.f32 1.5, %v802_v45 }
 0x558   :  { %v804_v49 = vmul.f32 %v1122_v39, %v803_v47 }
 0x55a   :  { %v808_v51 = vsel %vm807_vm10, %v1122_v39, %v804_v49 }
 0x55b   :  { %v810_v52 = vmul.f32 %v808_v51, %v1516_v37  ;;  %v913_v37 = vld [vmem:[%s1753_s7 + $0x20] sm:$0xff] }
 0x55c   :  { %956 = vmatpush.msra.mxu1 %v913_v37 }
 0x55d   :  { %v815_v53 = vmul.f32 %v1608_v11, %v810_v52 }
 0x55e   :  { %957 = vmatpush.msra.mxu1 %v912_v58 }
 0x55f   :  { %v820_v54 = vadd.f32 %v1620_v16, %v815_v53 }
 0x560   :  { %958 = vmatpush.msra.mxu1 %v911_v60 }
 0x561   :  { %878 = vmatmul.f32.gmra.mxu3 %v820_v54  ;;  %901 = vmatmul.f32.gmra.mxu0 %v820_v54 }
 0x562   :  { %959 = vmatpush.msra.mxu1 %v910_v61 }
 0x564   :  { %960 = vmatpush.msra.mxu1 %v909_v62 }
 0x5c5   :  { %v899_v1 = vpop.f32.mrf.mxu0 }
 0x5c6   :  { %v900_v2 = vadd.f32 %v899_v1, %v856_v0 }
 0x5c8   :  { %v906_v3 = vmax.f32 %v900_v2, 0.0 }
 0x5ca   :  { %984 = vmatmul.f32.vlgmr.msra.gmra.mxu2 %v906_v3 }
 0x5cb   :  { %v876_v5 = vpop.f32.mrf.mxu3 }
 0x5cc   :  { %v877_v6 = vadd.f32 %v876_v5, %v855_v4 }
 0x5ce   :  { %v905_v7 = vmax.f32 %v877_v6, 0.0 }
 0x5d0   :  { %961 = vmatmul.f32.vlgmr.msra.gmra.mxu1 %v905_v7 }
 0x5de   :  { %v902_v8 = vpop.f32.mrf.mxu0 }
 0x5df   :  { %v903_v9 = vadd.f32 %v902_v8, %v856_v0 }
 0x5e1   :  { %v908_v10 = vmax.f32 %v903_v9, 0.0 }
 0x5e3   :  { %987 = vmatmul.f32.gmra.mxu2 %v908_v10 }
 0x5e4   :  { %v879_v11 = vpop.f32.mrf.mxu3 }
 0x5e5   :  { %v880_v12 = vadd.f32 %v879_v11, %v855_v4 }
 0x5e7   :  { %v907_v13 = vmax.f32 %v880_v12, 0.0 }
 0x5e9   :  { %964 = vmatmul.f32.gmra.mxu1 %v907_v13 }
 0x64d   :  { %v962_v15 = vpop.f32.mrf.mxu1  ;;  %v985_v17 = vpop.f32.mrf.mxu2 }
 0x64e   :  { %v963_v16 = vadd.f32 %v1082_v14, %v962_v15 }
 0x650   :  { %v986_v18 = vadd.f32 %v985_v17, %v963_v16 }
 0x652   :  { %v991_v19 = vadd.f32 %v986_v18, %v1637_v24 }
 0x654   :  { %995 = vadd.xlane.f32.xlu2 %v991_v19 }
 0x666   :  { %v965_v20 = vpop.f32.mrf.mxu1  ;;  %v988_v22 = vpop.f32.mrf.mxu2 }
 0x667   :  { %v966_v21 = vadd.f32 %v1082_v14, %v965_v20 }
 0x669   :  { %v989_v23 = vadd.f32 %v988_v22, %v966_v21 }
 0x66b   :  { %v992_v26 = vadd.f32 %v989_v23, %v820_v54 }
 0x66d   :  { %997 = vadd.xlane.f32.xlu0 %v992_v26 }
 0x6c7   :  { %v996_v32 = vpop.xlane.xlu2 %995 }
 0x6c8   :  { %v999_v33 = vmul.f32 %v996_v32, %v1496_v25 }
 0x6ca   :  { %v1001_v27 = vsub.f32 %v991_v19, %v999_v33 }
 0x6cc   :  { %v1003_v28 = vmul.f32 %v1001_v27, %v1001_v27 }
 0x6ce   :  { %1005 = vadd.xlane.f32.xlu2 %v1003_v28 }
 0x6e0   :  { %v998_v29 = vpop.xlane.xlu0 %997 }
 0x6e1   :  { %v1000_v30 = vmul.f32 %v998_v29, %v1496_v25 }
 0x6e3   :  { %v1002_v31 = vsub.f32 %v992_v26, %v1000_v30 }
 0x6e5   :  { %v1004_v35 = vmul.f32 %v1002_v31, %v1002_v31 }
 0x6e7   :  { %1007 = vadd.xlane.f32.xlu0 %v1004_v35 }
 0x741   :  { %v1006_v24 = vpop.xlane.xlu2 %1005 }
 0x742   :  { %v1009_v36 = vmul.f32 %v1006_v24, %v1496_v25 }
 0x744   :  { %v1011_v38 = vadd.f32 1e-05, %v1009_v36 }
 0x746   :  { %1123 = vrsqrt.f32 %v1011_v38  ;;  %vm1019_vm12 = vweird.f32 %v1011_v38 }
 0x74c   :  { %v1124_v39 = vpop.eup %1123 }
 0x74d   :  { %v1014_v40 = vmul.f32 %v1124_v39, %v1011_v38  ;;  %vm1020_vm11 = vweird.f32 %v1124_v39 }
 0x74e   :  { %vm1021_vm13 = vmor %vm1019_vm12, %vm1020_vm11 }
 0x74f   :  { %v1015_v41 = vmul.f32 %v1124_v39, %v1014_v40 }
 0x751   :  { %v1016_v42 = vmul.f32 0.5, %v1015_v41 }
 0x753   :  { %v1017_v34 = vsub.f32 1.5, %v1016_v42 }
 0x755   :  { %v1018_v43 = vmul.f32 %v1124_v39, %v1017_v34 }
 0x757   :  { %v1022_v45 = vsel %vm1021_vm13, %v1124_v39, %v1018_v43 }
 0x758   :  { %v1033_v47 = vmul.f32 %v1022_v45, %v1001_v27 }
 0x75a   :  { %v1038_v48 = vmul.f32 %v1083_v44, %v1033_v47  ;;  %v1008_v49 = vpop.xlane.xlu0 %1007 }
 0x75b   :  { %v1010_v50 = vmul.f32 %v1008_v49, %v1496_v25 }
 0x75c   :  { %v1043_v51 = vadd.f32 %v1084_v46, %v1038_v48 }
 0x75d   :  { %v1012_v52 = vadd.f32 1e-05, %v1010_v50 }
 0x75e   :  { %1045 = vst [vmem:[%s1758_s13] sm:$0xff] %v1043_v51 }
 0x75f   :  { %1125 = vrsqrt.f32 %v1012_v52  ;;  %vm1029_vm15 = vweird.f32 %v1012_v52 }
 0x765   :  { %v1126_v53 = vpop.eup %1125 }
 0x766   :  { %v1024_v54 = vmul.f32 %v1126_v53, %v1012_v52  ;;  %vm1030_vm14 = vweird.f32 %v1126_v53 }
 0x767   :  { %vm1031_vm0 = vmor %vm1029_vm15, %vm1030_vm14 }
 0x768   :  { %v1025_v55 = vmul.f32 %v1126_v53, %v1024_v54 }
 0x76a   :  { %v1026_v56 = vmul.f32 0.5, %v1025_v55 }
 0x76c   :  { %v1027_v37 = vsub.f32 1.5, %v1026_v56 }
 0x76e   :  { %v1028_v57 = vmul.f32 %v1126_v53, %v1027_v37 }
 0x770   :  { %v1032_v58 = vsel %vm1031_vm0, %v1126_v53, %v1028_v57 }
 0x771   :  { %v1034_v59 = vmul.f32 %v1032_v58, %v1002_v31 }
 0x773   :  { %v1039_v60 = vmul.f32 %v1083_v44, %v1034_v59 }
 0x775   :  { %v1044_v25 = vadd.f32 %v1084_v46, %v1039_v60 }
 0x777   :  { %1046 = vst [vmem:[%s1758_s13 + $0x8] sm:$0xff] %v1044_v25 }

</bundles_post_ra>
